<compile_context>
chip_gen: v7x
topology: tpu7x:2x2x1
jax: 0.10.0
libtpu: 0.0.40
codegen_flags: <defaults>
</compile_context>

<pallas_src>
import functools

import jax
import jax.numpy as jnp
from jax.experimental import pallas as pl
from jax.experimental.pallas import tpu as pltpu


def _detect_num_cores():
    """TensorCores per chip (2 on v7x); defaults to 1 when unknown."""
    try:
        info = pltpu.get_tpu_info()
    except Exception:
        return 1
    for name in ("num_cores", "core_count", "num_tensorcores",
                 "tensorcore_count", "cores_per_chip", "num_cores_per_chip"):
        val = getattr(info, name, None)
        if isinstance(val, int) and val >= 1:
            return min(val, 2)
    return 1


def _custom_loss_kernel(x_ref, diff_ref, clamp_ref, dacc_ref, cacc_ref, *,
                        target, other, delta, batch, num_classes, pack,
                        rows_packed, block_rows, tiles_per_core):
    c_idx = pl.program_id(0)          # core (parallel) axis
    i_idx = pl.program_id(1)          # batch-tile (reduction) axis

    @pl.when(i_idx == 0)
    def _init():
        dacc_ref[...] = jnp.zeros_like(dacc_ref)
        cacc_ref[...] = jnp.zeros_like(cacc_ref)

    x = x_ref[...].astype(jnp.float32)                      # (tb, pack*C)
    tb = x.shape[0]

    # Global packed-row index (unclamped -> duplicate / edge-padded tiles are
    # sanitized here and masked out of the sums below).
    row0 = (c_idx * tiles_per_core + i_idx) * block_rows
    prow = row0 + jax.lax.broadcasted_iota(jnp.int32, (tb, 1), 0)   # (tb, 1)
    in_array = prow < rows_packed
    x = jnp.where(in_array, x, 0.0)                         # keep padded rows finite

    dt = float(max(delta, 0.0))       # clamp contribution of the target column

    # Row max + exp.  For the packed layout the max is over the whole packed
    # row; softmax is shift-invariant per segment so this is exact.
    m = jnp.max(x, axis=1, keepdims=True)                   # (tb, 1)  XLU
    e = jnp.exp(x - m)                                      # (tb, W)  EUP

    if pack == 1:
        # ---- un-packed path: one class-row per sublane row -----------------
        x_t = x_ref[:, target:target + 1].astype(jnp.float32)
        x_o = x_ref[:, other:other + 1].astype(jnp.float32)
        e_t = jnp.exp(x_t - m)
        e_o = jnp.exp(x_o - m)
        segsum = jnp.sum(e, axis=1, keepdims=True)          # (tb, 1)
        inv = pl.reciprocal(segsum, approx=True)
        inv = inv * (2.0 - segsum * inv)                    # Newton -> fp32
        thr = e_t - delta * segsum                          # (tb, 1)
        u_seg = jnp.sum(jnp.maximum(e - thr, 0.0), axis=1, keepdims=True)
    else:
        # ---- lane-packed path: `pack` class-rows per sublane row -----------
        width = pack * num_classes
        hp = jax.lax.Precision.HIGHEST                      # keep fp32 accuracy
        jj = jax.lax.broadcasted_iota(jnp.int32, (width, pack), 0)   # lane j
        ss = jax.lax.broadcasted_iota(jnp.int32, (width, pack), 1)   # segment s
        sel_sum = ((jj // num_classes) == ss).astype(jnp.float32)    # (W, pack)
        sel_tgt = jnp.where(jj == ss * num_classes + target, 1.0, 0.0)
        sel_oth = jnp.where(jj == ss * num_classes + other, 1.0, 0.0)

        # Segmented reductions on the (otherwise idle) MXU.
        segsum = jnp.dot(e, sel_sum, precision=hp,
                         preferred_element_type=jnp.float32)         # (tb, pack)
        e_t = jnp.dot(e, sel_tgt, precision=hp,
                      preferred_element_type=jnp.float32)
        e_o = jnp.dot(e, sel_oth, precision=hp,
                      preferred_element_type=jnp.float32)
        inv = pl.reciprocal(segsum, approx=True)
        inv = inv * (2.0 - segsum * inv)

        # Broadcast the per-segment clamp threshold back to the lanes (MXU).
        jj_t = jax.lax.broadcasted_iota(jnp.int32, (pack, width), 1)
        ss_t = jax.lax.broadcasted_iota(jnp.int32, (pack, width), 0)
        sel_sum_t = ((jj_t // num_classes) == ss_t).astype(jnp.float32)
        thr = e_t - delta * segsum                                    # (tb, pack)
        thr_b = jnp.dot(thr, sel_sum_t, precision=hp,
                        preferred_element_type=jnp.float32)           # (tb, W)
        u = jnp.maximum(e - thr_b, 0.0)
        u_seg = jnp.dot(u, sel_sum, precision=hp,
                        preferred_element_type=jnp.float32)           # (tb, pack)

    p_t = e_t * inv
    p_o = e_o * inv
    diff_seg = jnp.abs(p_t - p_o)                                     # (tb, pack)
    # Remaining-columns clamp sum with target/other removed algebraically:
    #   sum_all max(p + d - p_t, 0) = inv * sum_all max(e - (e_t - d*sum), 0)
    clamp_seg = u_seg * inv - (dt + jnp.maximum(p_o + delta - p_t, 0.0))

    seg = jax.lax.broadcasted_iota(jnp.int32, (tb, pack), 1)
    valid = (prow * pack + seg) < batch                               # (tb, pack)
    dacc_ref[...] += jnp.where(valid, diff_seg, 0.0)
    cacc_ref[...] += jnp.where(valid, clamp_seg, 0.0)

    @pl.when(i_idx == tiles_per_core - 1)
    def _finalize():
        diff_ref[...] = jnp.zeros_like(diff_ref) + jnp.sum(dacc_ref[...])
        clamp_ref[...] = jnp.zeros_like(clamp_ref) + jnp.sum(cacc_ref[...])


def _run_custom_loss(logits, *, target, other, delta, pack, block_rows,
                     num_cores):
    batch, num_classes = logits.shape

    # Small-C lane packing: row-major reshape (B, C) -> (B/k, k*C).
    x = logits
    if pack > 1:
        rows_packed = -(-batch // pack)
        if rows_packed * pack != batch:
            x = jnp.pad(x, ((0, rows_packed * pack - batch), (0, 0)))
        x = x.reshape(rows_packed, pack * num_classes)
    else:
        rows_packed = batch
    width = x.shape[1]

    itemsize = jnp.dtype(x.dtype).itemsize
    sub = 16 if itemsize < 4 else 8
    if block_rows is None:
        tb = max(sub, (4 * 1024 * 1024) // (width * itemsize))   # ~4 MiB block
        tb = min(tb, 4096)
    else:
        tb = max(1, int(block_rows))
    if tb >= rows_packed:
        tb = rows_packed                    # single full-extent block
    else:
        tb = max(sub, (tb // sub) * sub)    # sublane-aligned batch tile

    num_tiles = pl.cdiv(rows_packed, tb)
    num_cores = max(1, min(int(num_cores), num_tiles))
    tiles_per_core = pl.cdiv(num_tiles, num_cores)

    kernel = functools.partial(
        _custom_loss_kernel,
        target=int(target), other=int(other), delta=float(delta),
        batch=batch, num_classes=num_classes, pack=pack,
        rows_packed=rows_packed, block_rows=tb, tiles_per_core=tiles_per_core)

    out_tile = jax.ShapeDtypeStruct((num_cores * 8, 128), jnp.float32)
    block_bytes = tb * width * itemsize
    vmem_limit = int(min(64 * 1024 * 1024,
                         max(16 * 1024 * 1024,
                             4 * block_bytes + 4 * tb * 128 * 4)))

    in_spec = pl.BlockSpec(
        (tb, width),
        lambda c, i: (jnp.minimum(c * tiles_per_core + i, num_tiles - 1), 0))

    grid_spec = pltpu.PrefetchScalarGridSpec(
        num_scalar_prefetch=0,
        grid=(num_cores, tiles_per_core),
        in_specs=[in_spec],
        out_specs=(pl.BlockSpec((8, 128), lambda c, i: (c, 0)),
                   pl.BlockSpec((8, 128), lambda c, i: (c, 0))),
        scratch_shapes=[pltpu.VMEM((tb, pack), jnp.float32),
                        pltpu.VMEM((tb, pack), jnp.float32)])

    cost = pl.CostEstimate(
        flops=12 * batch * num_classes,
        transcendentals=batch * num_classes + 2 * batch,
        bytes_accessed=rows_packed * width * itemsize
        + 2 * num_cores * 8 * 128 * 4)

    diff_tile, clamp_tile = pl.pallas_call(
        kernel,
        out_shape=(out_tile, out_tile),
        grid_spec=grid_spec,
        compiler_params=pltpu.CompilerParams(
            dimension_semantics=("parallel", "arbitrary"),
            vmem_limit_bytes=vmem_limit),
        cost_estimate=cost,
    )(x)

    # Each core's (8, 128) tile holds its scalar total broadcast everywhere.
    total_diff = jnp.sum(diff_tile[0::8, 0])
    total_clamp = jnp.sum(clamp_tile[0::8, 0])
    return total_diff, total_clamp


def custom_loss(logits, *, target, other, lambda1=1.0, lambda2=1.0,
                delta=0.02, block_rows=None, num_cores=None):
    """Pallas implementation of CustomLoss.forward.  logits: (B, C) float."""
    batch, num_classes = logits.shape
    if num_cores is None:
        num_cores = _detect_num_cores()

    # Pack k class-rows per sublane row when C is small enough that the
    # natural layout would leave most of the 128 lanes idle.
    pack = 1
    if num_classes <= 64:
        pack = max(1, min(128 // num_classes, batch // 8))

    try:
        total_diff, total_clamp = _run_custom_loss(
            logits, target=target, other=other, delta=delta,
            pack=pack, block_rows=block_rows, num_cores=num_cores)
    except Exception:
        if pack == 1:
            raise
        # Safety net: fall back to the proven unpacked path.
        total_diff, total_clamp = _run_custom_loss(
            logits, target=target, other=other, delta=delta,
            pack=1, block_rows=block_rows, num_cores=num_cores)

    loss1 = lambda1 * total_diff / batch
    loss2 = lambda2 * total_clamp / batch
    loss = loss1 + loss2
    return {'loss': loss, 'loss1': loss1, 'loss2': loss2}


def _ref_custom_loss(logits, *, target, other, lambda1=1.0, lambda2=1.0,
                     delta=0.02):
    """Pure-JAX reference (mirrors the PyTorch module) for validation."""
    probs = jax.nn.softmax(logits.astype(jnp.float32), axis=1)
    p_target = probs[:, target]
    p_other = probs[:, other]
    l_diff = jnp.abs(p_target - p_other)
    B, C = probs.shape
    keep = jnp.array([c for c in range(C) if c not in (target, other)])
    p_remains = probs[:, keep]                              # (B, C-2)
    l_max = jnp.mean(jnp.maximum(
        p_remains + delta - p_target[:, None], 0.0)) * p_remains.shape[1]
    loss1 = lambda1 * jnp.mean(l_diff)
    loss2 = lambda2 * l_max
    return {'loss': loss1 + loss2, 'loss1': loss1, 'loss2': loss2}


if __name__ == "__main__":
    def make(idx, b, c, dtype=jnp.float32):
        key = jax.random.fold_in(jax.random.PRNGKey(0), idx)
        return jax.random.normal(key, (b, c), jnp.float32).astype(dtype)

    cases = [
        # (name,               B,   C,   target, other, dtype,        block_rows)
        ("tiny-unpacked",       8,  16,  1,      3,     jnp.float32,  None),
        ("packed-single-tile", 64,  16,  1,      3,     jnp.float32,  None),
        ("packed-multi-tile", 603,  16,  2,      9,     jnp.float32,  32),
        ("unpacked-multi",     24, 200,  5,     17,     jnp.float32,  16),
        ("packed-bf16",        64,  16,  0,      7,     jnp.bfloat16, None),
    ]

    for idx, (name, b, c, tgt, oth, dt, br) in enumerate(cases):
        logits = make(idx, b, c, dt)
        out = jax.block_until_ready(
            custom_loss(logits, target=tgt, other=oth,
                        lambda1=1.0, lambda2=1.0, delta=0.02, block_rows=br))
        ref = _ref_custom_loss(logits, target=tgt, other=oth,
                               lambda1=1.0, lambda2=1.0, delta=0.02)
        for k in ('loss', 'loss1', 'loss2'):
            assert jnp.allclose(out[k], ref[k], atol=2e-5, rtol=2e-5), (
                name, k, float(out[k]), float(ref[k]))

    print("KERNEL_OK")
</pallas_src>

<mosaic_0001>
module attributes {stable_mosaic.version = 11 : i64} {
  func.func @_custom_loss_kernel(%arg0: i32, %arg1: i32, %arg2: memref<8x16xf32, #tpu.memory_space<vmem>>, %arg3: memref<8x128xf32, #tpu.memory_space<vmem>>, %arg4: memref<8x128xf32, #tpu.memory_space<vmem>>, %arg5: memref<8x1xf32, #tpu.memory_space<vmem>>, %arg6: memref<8x1xf32, #tpu.memory_space<vmem>>) attributes {dimension_semantics = [#tpu.dimension_semantics<parallel>, #tpu.dimension_semantics<arbitrary>], iteration_bounds = array<i64: 1, 1>, scalar_prefetch = 0 : i64, scratch_operands = 2 : i64, tpu.core_type = #tpu.core_type<tc>, window_params = [{transform_indices = @transform_0, window_bounds = array<i64: 8, 16>}, {transform_indices = @transform_1, window_bounds = array<i64: 8, 128>}, {transform_indices = @transform_2, window_bounds = array<i64: 8, 128>}]} {
    %c0_i32 = arith.constant 0 : i32
    %0 = arith.cmpi eq, %arg1, %c0_i32 : i32
    %1 = arith.extui %0 : i1 to i32
    %c0_i32_0 = arith.constant 0 : i32
    %2 = arith.cmpi ne, %1, %c0_i32_0 : i32
    scf.if %2 {
      %cst_28 = arith.constant 0.000000e+00 : f32
      %75 = vector.broadcast %cst_28 : f32 to vector<8x1xf32>
      %c0_29 = arith.constant 0 : index
      %c0_30 = arith.constant 0 : index
      %76 = vector.load %arg5[%c0_29, %c0_30] : memref<8x1xf32, #tpu.memory_space<vmem>>, vector<8x1xf32>
      tpu.vector_store %arg5[%c0_29, %c0_30], %75 {strides = array<i32>} : memref<8x1xf32, #tpu.memory_space<vmem>>, vector<8x1xf32>,
      %cst_31 = arith.constant 0.000000e+00 : f32
      %77 = vector.broadcast %cst_31 : f32 to vector<8x1xf32>
      %c0_32 = arith.constant 0 : index
      %c0_33 = arith.constant 0 : index
      %78 = vector.load %arg6[%c0_32, %c0_33] : memref<8x1xf32, #tpu.memory_space<vmem>>, vector<8x1xf32>
      tpu.vector_store %arg6[%c0_32, %c0_33], %77 {strides = array<i32>} : memref<8x1xf32, #tpu.memory_space<vmem>>, vector<8x1xf32>,
    } else {
    }
    %c0 = arith.constant 0 : index
    %c0_1 = arith.constant 0 : index
    %3 = vector.load %arg2[%c0, %c0_1] : memref<8x16xf32, #tpu.memory_space<vmem>>, vector<8x16xf32>
    %c1_i32 = arith.constant 1 : i32
    %4 = arith.muli %arg0, %c1_i32 : i32
    %5 = arith.addi %4, %arg1 : i32
    %c8_i32 = arith.constant 8 : i32
    %6 = arith.muli %5, %c8_i32 : i32
    %7 = tpu.iota {dimensions = array<i32: 0>} : vector<8x1xi32>
    %8 = vector.broadcast %6 : i32 to vector<8x1xi32>
    %9 = arith.addi %8, %7 : vector<8x1xi32>
    %c8_i32_2 = arith.constant 8 : i32
    %10 = vector.broadcast %c8_i32_2 : i32 to vector<8x1xi32>
    %11 = arith.cmpi slt, %9, %10 : vector<8x1xi32>
    %cst = arith.constant 0.000000e+00 : f32
    %12 = vector.shape_cast %11 : vector<8x1xi1> to vector<8x1xi1>
    %13 = vector.broadcast %12 : vector<8x1xi1> to vector<8x16xi1>
    %14 = vector.broadcast %cst : f32 to vector<8x16xf32>
    %15 = arith.select %13, %3, %14 : vector<8x16xi1>, vector<8x16xf32>
    %cst_3 = arith.constant dense<0xFF800000> : vector<8xf32>
    %16 = vector.multi_reduction <maximumf>, %15, %cst_3 [1] : vector<8x16xf32> to vector<8xf32>
    %17 = vector.shape_cast %16 : vector<8xf32> to vector<8x1xf32>
    %18 = vector.broadcast %17 : vector<8x1xf32> to vector<8x16xf32>
    %19 = arith.subf %15, %18 : vector<8x16xf32>
    %20 = math.exp %19 : vector<8x16xf32>
    %c0_4 = arith.constant 0 : index
    %c1 = arith.constant 1 : index
    %21 = vector.load %arg2[%c0_4, %c1] : memref<8x16xf32, #tpu.memory_space<vmem>>, vector<8x1xf32>
    %c0_5 = arith.constant 0 : index
    %c3 = arith.constant 3 : index
    %22 = vector.load %arg2[%c0_5, %c3] : memref<8x16xf32, #tpu.memory_space<vmem>>, vector<8x1xf32>
    %23 = arith.subf %21, %17 : vector<8x1xf32>
    %24 = math.exp %23 : vector<8x1xf32>
    %25 = arith.subf %22, %17 : vector<8x1xf32>
    %26 = math.exp %25 : vector<8x1xf32>
    %cst_6 = arith.constant dense<0.000000e+00> : vector<8xf32>
    %27 = vector.multi_reduction <add>, %20, %cst_6 [1] : vector<8x16xf32> to vector<8xf32>
    %28 = vector.shape_cast %27 : vector<8xf32> to vector<8x1xf32>
    %29 = tpu.reciprocal %28 {approx = true} : vector<8x1xf32> -> vector<8x1xf32>
    %30 = arith.mulf %28, %29 : vector<8x1xf32>
    %cst_7 = arith.constant 2.000000e+00 : f32
    %31 = vector.broadcast %cst_7 : f32 to vector<8x1xf32>
    %32 = arith.subf %31, %30 : vector<8x1xf32>
    %33 = arith.mulf %29, %32 : vector<8x1xf32>
    %cst_8 = arith.constant 2.000000e-02 : f32
    %34 = vector.broadcast %cst_8 : f32 to vector<8x1xf32>
    %35 = arith.mulf %34, %28 : vector<8x1xf32>
    %36 = arith.subf %24, %35 : vector<8x1xf32>
    %37 = vector.broadcast %36 : vector<8x1xf32> to vector<8x16xf32>
    %38 = arith.subf %20, %37 : vector<8x16xf32>
    %cst_9 = arith.constant 0.000000e+00 : f32
    %39 = vector.broadcast %cst_9 : f32 to vector<8x16xf32>
    %40 = arith.maximumf %38, %39 : vector<8x16xf32>
    %cst_10 = arith.constant dense<0.000000e+00> : vector<8xf32>
    %41 = vector.multi_reduction <add>, %40, %cst_10 [1] : vector<8x16xf32> to vector<8xf32>
    %42 = vector.shape_cast %41 : vector<8xf32> to vector<8x1xf32>
    %43 = arith.mulf %24, %33 : vector<8x1xf32>
    %44 = arith.mulf %26, %33 : vector<8x1xf32>
    %45 = arith.subf %43, %44 : vector<8x1xf32>
    %46 = math.absf %45 : vector<8x1xf32>
    %47 = arith.mulf %42, %33 : vector<8x1xf32>
    %cst_11 = arith.constant 2.000000e-02 : f32
    %48 = vector.broadcast %cst_11 : f32 to vector<8x1xf32>
    %49 = arith.addf %44, %48 : vector<8x1xf32>
    %50 = arith.subf %49, %43 : vector<8x1xf32>
    %cst_12 = arith.constant 0.000000e+00 : f32
    %51 = vector.broadcast %cst_12 : f32 to vector<8x1xf32>
    %52 = arith.maximumf %50, %51 : vector<8x1xf32>
    %cst_13 = arith.constant 2.000000e-02 : f32
    %53 = vector.broadcast %cst_13 : f32 to vector<8x1xf32>
    %54 = arith.addf %53, %52 : vector<8x1xf32>
    %55 = arith.subf %47, %54 : vector<8x1xf32>
    %56 = tpu.iota {dimensions = array<i32: 1>} : vector<8x1xi32>
    %c1_i32_14 = arith.constant 1 : i32
    %57 = vector.broadcast %c1_i32_14 : i32 to vector<8x1xi32>
    %58 = arith.muli %9, %57 : vector<8x1xi32>
    %59 = arith.addi %58, %56 : vector<8x1xi32>
    %c8_i32_15 = arith.constant 8 : i32
    %60 = vector.broadcast %c8_i32_15 : i32 to vector<8x1xi32>
    %61 = arith.cmpi slt, %59, %60 : vector<8x1xi32>
    %c0_16 = arith.constant 0 : index
    %c0_17 = arith.constant 0 : index
    %62 = vector.load %arg5[%c0_16, %c0_17] : memref<8x1xf32, #tpu.memory_space<vmem>>, vector<8x1xf32>
    %cst_18 = arith.constant 0.000000e+00 : f32
    %63 = vector.broadcast %cst_18 : f32 to vector<8x1xf32>
    %64 = arith.select %61, %46, %63 : vector<8x1xi1>, vector<8x1xf32>
    %65 = arith.addf %62, %64 : vector<8x1xf32>
    %c0_19 = arith.constant 0 : index
    %c0_20 = arith.constant 0 : index
    %66 = vector.load %arg5[%c0_19, %c0_20] : memref<8x1xf32, #tpu.memory_space<vmem>>, vector<8x1xf32>
    tpu.vector_store %arg5[%c0_19, %c0_20], %65 {strides = array<i32>} : memref<8x1xf32, #tpu.memory_space<vmem>>, vector<8x1xf32>,
    %c0_21 = arith.constant 0 : index
    %c0_22 = arith.constant 0 : index
    %67 = vector.load %arg6[%c0_21, %c0_22] : memref<8x1xf32, #tpu.memory_space<vmem>>, vector<8x1xf32>
    %cst_23 = arith.constant 0.000000e+00 : f32
    %68 = vector.broadcast %cst_23 : f32 to vector<8x1xf32>
    %69 = arith.select %61, %55, %68 : vector<8x1xi1>, vector<8x1xf32>
    %70 = arith.addf %67, %69 : vector<8x1xf32>
    %c0_24 = arith.constant 0 : index
    %c0_25 = arith.constant 0 : index
    %71 = vector.load %arg6[%c0_24, %c0_25] : memref<8x1xf32, #tpu.memory_space<vmem>>, vector<8x1xf32>
    tpu.vector_store %arg6[%c0_24, %c0_25], %70 {strides = array<i32>} : memref<8x1xf32, #tpu.memory_space<vmem>>, vector<8x1xf32>,
    %c0_i32_26 = arith.constant 0 : i32
    %72 = arith.cmpi eq, %arg1, %c0_i32_26 : i32
    %73 = arith.extui %72 : i1 to i32
    %c0_i32_27 = arith.constant 0 : i32
    %74 = arith.cmpi ne, %73, %c0_i32_27 : i32
    scf.if %74 {
      %cst_28 = arith.constant 0.000000e+00 : f32
      %75 = vector.broadcast %cst_28 : f32 to vector<8x128xf32>
      %c0_29 = arith.constant 0 : index
      %c0_30 = arith.constant 0 : index
      %76 = vector.load %arg5[%c0_29, %c0_30] : memref<8x1xf32, #tpu.memory_space<vmem>>, vector<8x1xf32>
      %77 = vector.shape_cast %76 : vector<8x1xf32> to vector<1x8x1xf32>
      %cst_31 = arith.constant dense<0.000000e+00> : vector<1xf32>
      %78 = vector.multi_reduction <add>, %77, %cst_31 [1, 2] : vector<1x8x1xf32> to vector<1xf32>
      %79 = vector.shape_cast %78 : vector<1xf32> to vector<1x1x1xf32>
      %80 = vector.extract %79[0, 0, 0] : f32 from vector<1x1x1xf32>
      %81 = vector.broadcast %80 : f32 to vector<8x128xf32>
      %82 = arith.addf %75, %81 : vector<8x128xf32>
      %c0_32 = arith.constant 0 : index
      %c0_33 = arith.constant 0 : index
      %83 = vector.load %arg3[%c0_32, %c0_33] : memref<8x128xf32, #tpu.memory_space<vmem>>, vector<8x128xf32>
      tpu.vector_store %arg3[%c0_32, %c0_33], %82 {strides = array<i32>} : memref<8x128xf32, #tpu.memory_space<vmem>>, vector<8x128xf32>,
      %cst_34 = arith.constant 0.000000e+00 : f32
      %84 = vector.broadcast %cst_34 : f32 to vector<8x128xf32>
      %c0_35 = arith.constant 0 : index
      %c0_36 = arith.constant 0 : index
      %85 = vector.load %arg6[%c0_35, %c0_36] : memref<8x1xf32, #tpu.memory_space<vmem>>, vector<8x1xf32>
      %86 = vector.shape_cast %85 : vector<8x1xf32> to vector<1x8x1xf32>
      %cst_37 = arith.constant dense<0.000000e+00> : vector<1xf32>
      %87 = vector.multi_reduction <add>, %86, %cst_37 [1, 2] : vector<1x8x1xf32> to vector<1xf32>
      %88 = vector.shape_cast %87 : vector<1xf32> to vector<1x1x1xf32>
      %89 = vector.extract %88[0, 0, 0] : f32 from vector<1x1x1xf32>
      %90 = vector.broadcast %89 : f32 to vector<8x128xf32>
      %91 = arith.addf %84, %90 : vector<8x128xf32>
      %c0_38 = arith.constant 0 : index
      %c0_39 = arith.constant 0 : index
      %92 = vector.load %arg4[%c0_38, %c0_39] : memref<8x128xf32, #tpu.memory_space<vmem>>, vector<8x128xf32>
      tpu.vector_store %arg4[%c0_38, %c0_39], %91 {strides = array<i32>} : memref<8x128xf32, #tpu.memory_space<vmem>>, vector<8x128xf32>,
    } else {
    }
    return
  }
  func.func @transform_0(%arg0: i32, %arg1: i32) -> (i32, i32) {
    %c1_i32 = arith.constant 1 : i32
    %0 = arith.muli %arg0, %c1_i32 : i32
    %1 = arith.addi %0, %arg1 : i32
    %c0_i32 = arith.constant 0 : i32
    %2 = arith.minsi %1, %c0_i32 : i32
    %c0_i32_0 = arith.constant 0 : i32
    %c0_i32_1 = arith.constant 0 : i32
    return %2, %c0_i32_0 : i32, i32
  }
  func.func @transform_1(%arg0: i32, %arg1: i32) -> (i32, i32) {
    %c0_i32 = arith.constant 0 : i32
    %c0_i32_0 = arith.constant 0 : i32
    return %arg0, %c0_i32 : i32, i32
  }
  func.func @transform_2(%arg0: i32, %arg1: i32) -> (i32, i32) {
    %c0_i32 = arith.constant 0 : i32
    %c0_i32_0 = arith.constant 0 : i32
    return %arg0, %c0_i32 : i32, i32
  }
}

</mosaic_0001>

<bundles_post_ra>
// kernel: tpu_custom_call.1
= control target key start
LH: loop header
LB: loop body
LE: loop exit
PB: predicated region body
PF: predicated region fallthrough
CT: control target
= control target key end

     0   :  { %8 = vsyncpa [#allocation5], 0  ;;  %s340_s0 = inlined_call_operand.hbm [shape: f32[8,16], index: 0, kind: input, shape index: {}]   ;;  %s341_s1 = inlined_call_operand.hbm [shape: f32[8,128], index: 1, kind: output, shape index: {0}]   ;;  %s342_s2 = inlined_call_operand.hbm [shape: f32[8,128], index: 2, kind: output, shape index: {1}]  }
   0x1   :  { %9 = vsyncpa [#allocation6], 0 }
   0x2   :  { %10 = vsyncpa [#allocation9], 0  ;;  %s269_s9 = smov [#allocation4]   ;;  %s197_s13 = scalar_lea.hbm %s340_s0, 128 }
   0x3   :  { %s22_s10 = sshll.u32 %s269_s9, 4  ;;  %p198_p0 = scmp.ne.s32.totalorder %s340_s0, %s197_s13  ;;  %s23_s10 = int_to_ptr.vmem [resolvable:$true] %s22_s10 }
   0x4   :  { %p201_p1 = scmp.lt.u32.totalorder %s197_s13, %s340_s0 }
   0x6   :  { %p203_p2 = pnand %p201_p1, %p198_p0 }
   0x8   :  { %206 = shalt.err (!%p203_p2)
}
   0x9   :  { %s207_s18 = scalar_lea.vmem %s23_s10, 128  ;;  %p212_p4 = scmp.lt.s32.totalorder %s23_s10, %s23_s10 }
   0xa   :  { %p208_p3 = scmp.ne.s32.totalorder %s23_s10, %s207_s18  ;;  %p213_p5 = scmp.lt.s32.totalorder %s207_s18, %s207_s18 }
   0xc   :  { %p214_p6 = por %p213_p5, %p212_p4 }
   0xe   :  { %p215_p7 = pnand %p214_p6, %p208_p3 }
  0x10   :  { %218 = shalt.err (!%p215_p7)
}
  0x11   :  { %25 = dma.hbm_to_vmem [thread:$0]  %s340_s0, 128, %s23_s10, [#allocation5]  }
  0x12   :  { %263 = dma.done.wait [#allocation5], 128  }
  0x13   :  { %264 = vsyncadd [#allocation5], 4294967168  ;;  %vm50_vm0 = vcmask 130048   ;;  %v39_v0 = vld [vmem:[#allocation4] sm:$0xff]  ;;  %v270_v7 = vmov 1   ;;  %vm36_vm1 = vcmask 7168   ;;  %v42_v25 = vlaneseq }
  0x14   :  { %v51_v1 = vsel %vm50_vm0, %v39_v0, -inf  ;;  %191 = vset.pattern.permute.xlu1 %v270_v7  ;;  %192 = vset.pattern.permute.xlu0 %v270_v7  ;;  %v271_v15 = vmov 0.0   ;;  %s272_s0 = smov 2   ;;  %s273_s21 = smov 126  }
  0x15   :  { %52 = vmax.xlane.f32.xlu0 %v51_v1  ;;  %37 = vst.msk [vmem:[#allocation2] sm:$0xff] %vm36_vm1, %v271_v15  ;;  %38 = vst.msk [vmem:[#allocation3] sm:$0xff] %vm36_vm1, %v271_v15  ;;  %s274_s22 = smov 127   ;;  %v43_v26 = vshrl.u32 %v42_v25, 7  ;;  %v96_v27 = vand.u32 127, %v42_v25  ;;  %s275_s23 = smov 125  }
  0x16   :  { %s276_s25 = smov [#allocation7]  }
  0x17   :  { %v97_v28 = vadd.s32 %v96_v27, %v43_v26  ;;  %s153_s26 = sshll.u32 %s276_s25, 4  ;;  %s154_s26 = int_to_ptr.vmem [resolvable:$true] %s153_s26 }
  0x18   :  { %s219_s27 = scalar_lea.vmem %s154_s26, 128  ;;  %p224_p9 = scmp.lt.s32.totalorder %s154_s26, %s154_s26 }
  0x19   :  { %vm98_vm2 = vcmp.lt.s32.totalorder %v97_v28, 8  ;;  %p220_p8 = scmp.ne.s32.totalorder %s154_s26, %s219_s27  ;;  %p225_p10 = scmp.lt.s32.totalorder %s219_s27, %s219_s27 }
  0x1b   :  { %p226_p11 = por %p225_p10, %p224_p9 }
  0x1c   :  { %v99_v29 = vld [vmem:[#allocation2] sm:$0xff]  ;;  %v108_v42 = vld [vmem:[#allocation3] sm:$0xff] }
  0x1d   :  { %p227_p12 = pnand %p226_p11, %p220_p8 }
  0xa2   :  { %v53_v2 = vpop.xlane.xlu0 %52 }
  0xa3   :  { %v54_v3 = vsub.f32 %v39_v0, %v53_v2 }
  0xa5   :  { %v55_v4 = vmul.f32 1.442695, %v54_v3 }
  0xa7   :  { %193 = vpow2.f32 %v55_v4 }
  0xb1   :  { %v194_v5 = vpop.eup %193 }
  0xb2   :  { %v60_v6 = vsel %vm50_vm0, %v194_v5, 0.0 }
  0xb3   :  { %61 = vadd.xlane.f32.xlu0 %v60_v6 }
 0x140   :  { %v62_v8 = vpop.xlane.xlu0 %61 }
 0x141   :  { %195 = vrcp.f32 %v62_v8  ;;  %v67_v9 = vmul.f32 0.02, %v62_v8 }
 0x143   :  { %v68_v10 = vsub.f32 %v194_v5, %v67_v9 }
 0x145   :  { %71 = vperm.xlu1 %191, %v68_v10  }
 0x14b   :  { %v196_v11 = vpop.eup %195 }
 0x14c   :  { %v64_v12 = vmul.f32 %v196_v11, %v62_v8 }
 0x14e   :  { %v65_v13 = vsub.f32 2.0, %v64_v12 }
 0x150   :  { %v66_v14 = vmul.f32 %v196_v11, %v65_v13 }
 0x152   :  { %v79_v16 = vmul.f32 %v194_v5, %v66_v14 }
 0x154   :  { %88 = vrot.lane.b32.xlu0 %v79_v16, %s272_s0  ;;  %v87_v35 = vadd.f32 0.02, %v79_v16 }
 0x158   :  { %81 = vrot.lane.b32.xlu0 %v79_v16, %s273_s21 }
 0x1c4   :  { %v72_v17 = vpop.permute.xlu1 %71 }
 0x1c5   :  { %v74_v18 = vsub.f32 %v194_v5, %v72_v17 }
 0x1c6   :  { %v89_v19 = vpop.permute.xlu0 %88 }
 0x1c7   :  { %v75_v20 = vmax.f32 %v74_v18, 0.0  ;;  %v91_v36 = vsub.f32 %v87_v35, %v89_v19 }
 0x1c9   :  { %v76_v21 = vsel %vm50_vm0, %v75_v20, 0.0  ;;  %v92_v37 = vmax.f32 %v91_v36, 0.0 }
 0x1ca   :  { %77 = vadd.xlane.f32.xlu1 %v76_v21  ;;  %v82_v22 = vpop.permute.xlu0 %81 }
 0x1cb   :  { %v84_v23 = vsub.f32 %v79_v16, %v82_v22  ;;  %v93_v39 = vadd.f32 0.02, %v92_v37 }
 0x1cd   :  { %v85_v24 = vand.u32 2147483647, %v84_v23 }
 0x1cf   :  { %101 = vrot.lane.b32.xlu0 %v85_v24, %s274_s22 }
 0x241   :  { %v102_v30 = vpop.permute.xlu0 %101 }
 0x242   :  { %v104_v31 = vsel %vm98_vm2, %v102_v30, 0.0 }
 0x243   :  { %v105_v32 = vadd.f32 %v104_v31, %v99_v29 }
 0x245   :  { %107 = vst.msk [vmem:[#allocation2] sm:$0xff] %vm36_vm1, %v105_v32 }
 0x24c   :  { %v119_v33 = vld [vmem:[#allocation2] sm:$0xff] }
 0x24d   :  { %v120_v34 = vsel %vm36_vm1, %v119_v33, 0.0 }
 0x24e   :  { %121 = vadd.xlane.f32.xlu1 %v120_v34 }
 0x257   :  { %v78_v38 = vpop.xlane.xlu1 %77 }
 0x258   :  { %v86_v40 = vmul.f32 %v78_v38, %v66_v14 }
 0x25a   :  { %v94_v41 = vsub.f32 %v86_v40, %v93_v39 }
 0x25c   :  { %110 = vrot.lane.b32.xlu0 %v94_v41, %s275_s23 }
 0x2ce   :  { %v111_v43 = vpop.permute.xlu0 %110 }
 0x2cf   :  { %v113_v44 = vsel %vm98_vm2, %v111_v43, 0.0 }
 0x2d0   :  { %v114_v45 = vadd.f32 %v113_v44, %v108_v42 }
 0x2d2   :  { %115 = vst.msk [vmem:[#allocation3] sm:$0xff] %vm36_vm1, %v114_v45 }
 0x2d9   :  { %v133_v46 = vld [vmem:[#allocation3] sm:$0xff] }
 0x2da   :  { %v134_v47 = vsel %vm36_vm1, %v133_v46, 0.0 }
 0x2db   :  { %135 = vadd.xlane.f32.xlu0 %v134_v47  ;;  %v122_v48 = vpop.xlane.xlu1 %121 }
 0x2dc   :  { %v123_v49 = vrot.slane %v122_v48, 4 }
 0x2de   :  { %v124_v50 = vadd.f32 %v123_v49, %v122_v48 }
 0x2e0   :  { %v125_v51 = vrot.slane %v124_v50, 2 }
 0x2e2   :  { %v126_v52 = vadd.f32 %v125_v51, %v124_v50 }
 0x2e4   :  { %v127_v53 = vrot.slane %v126_v52, 1 }
 0x2e6   :  { %v128_v54 = vadd.f32 %v127_v53, %v126_v52 }
 0x2e8   :  { %178 = vpush %v128_v54 }
 0x319   :  { %s179_s24 = spop %178 }
 0x31a   :  { %v130_v55 = vstv %s179_s24 }
 0x31b   :  { %132 = vst [vmem:[#allocation7] sm:$0xff] %v130_v55 }
 0x31c   :  { %230 = shalt.err (!%p227_p12)
}
 0x31d   :  { %s231_s30 = scalar_lea.hbm %s341_s1, 128 }
 0x31e   :  { %p232_p13 = scmp.ne.s32.totalorder %s341_s1, %s231_s30  ;;  %p235_p0 = scmp.lt.u32.totalorder %s231_s30, %s341_s1 }
 0x320   :  { %p237_p1 = pnand %p235_p0, %p232_p13 }
 0x322   :  { %240 = shalt.err (!%p237_p1)
}
 0x323   :  { %156 = dma.vmem_to_hbm [thread:$0]  %s154_s26, 128, %s341_s1, [#allocation6]  }
 0x324   :  { %s277_s9 = smov [#allocation8]  }
 0x325   :  { %s163_s10 = sshll.u32 %s277_s9, 4  ;;  %s164_s10 = int_to_ptr.vmem [resolvable:$true] %s163_s10 }
 0x326   :  { %s241_s12 = scalar_lea.vmem %s164_s10, 128  ;;  %p246_p3 = scmp.lt.s32.totalorder %s164_s10, %s164_s10 }
 0x327   :  { %p242_p2 = scmp.ne.s32.totalorder %s164_s10, %s241_s12  ;;  %p247_p4 = scmp.lt.s32.totalorder %s241_s12, %s241_s12 }
 0x329   :  { %p248_p5 = por %p247_p4, %p246_p3 }
 0x32b   :  { %p249_p6 = pnand %p248_p5, %p242_p2 }
 0x368   :  { %v136_v56 = vpop.xlane.xlu0 %135 }
 0x369   :  { %v137_v57 = vrot.slane %v136_v56, 4 }
 0x36b   :  { %v138_v58 = vadd.f32 %v137_v57, %v136_v56 }
 0x36d   :  { %v139_v59 = vrot.slane %v138_v58, 2 }
 0x36f   :  { %v140_v60 = vadd.f32 %v139_v59, %v138_v58 }
 0x371   :  { %v141_v61 = vrot.slane %v140_v60, 1 }
 0x373   :  { %v142_v62 = vadd.f32 %v141_v61, %v140_v60 }
 0x375   :  { %180 = vpush %v142_v62 }
 0x3a6   :  { %s181_s11 = spop %180 }
 0x3a7   :  { %v144_v63 = vstv %s181_s11 }
 0x3a8   :  { %146 = vst [vmem:[#allocation8] sm:$0xff] %v144_v63 }
 0x3a9   :  { %252 = shalt.err (!%p249_p6)
}
 0x3aa   :  { %s253_s14 = scalar_lea.hbm %s342_s2, 128 }
 0x3ab   :  { %p254_p7 = scmp.ne.s32.totalorder %s342_s2, %s253_s14  ;;  %p257_p8 = scmp.lt.u32.totalorder %s253_s14, %s342_s2 }
 0x3ad   :  { %p259_p9 = pnand %p257_p8, %p254_p7 }
 0x3af   :  { %262 = shalt.err (!%p259_p9)
}
 0x3b0   :  { %166 = dma.vmem_to_hbm [thread:$0]  %s164_s10, 128, %s342_s2, [#allocation9]  }
 0x3b1   :  { %265 = dma.done.wait [#allocation6], 128  }
 0x3b2   :  { %266 = vsyncadd [#allocation6], 4294967168 }
 0x3b3   :  { %267 = dma.done.wait [#allocation9], 128  }
 0x3b4   :  { %268 = vsyncadd [#allocation9], 4294967168 }
 0x3b5   :  { %173 = vsyncpa [#allocation5], 1 }
 0x3b6   :  { %174 = vsyncpa [#allocation6], 1 }
 0x3b7   :  { %175 = vsyncpa [#allocation9], 1 }

</bundles_post_ra>
